<compile_context>
chip_gen: v5e
topology: v5e:2x2
jax: 0.10.0
libtpu: 0.0.40
codegen_flags: <defaults>
</compile_context>

<pallas_src>
import functools
import math

import jax
import jax.numpy as jnp
from jax.experimental import pallas as pl
from jax.experimental.pallas import tpu as pltpu


def _label_smoothing_kernel(tgt_ref, x_ref, xpad_ref, out_ref, acc_ref, *,
                            padding_idx, confidence, base, ent_const):
    j = pl.program_id(1)                  # vocab (reduction) step
    nv = pl.num_programs(1)

    @pl.when(j == 0)
    def _init():
        acc_ref[...] = jnp.zeros_like(acc_ref)

    xf = x_ref[...].astype(jnp.float32)   # (tb, tv), upcast on-chip (bf16 ok)
    tgt = tgt_ref[...]                    # (tb, 1) int32 class indices
    tb, tv = xf.shape

    # Loop-invariant local column iota; fold the j-dependence into a
    # (tile_b, 1) scalar-side subtraction on the target index instead of a
    # full-tile add.
    col_local = jax.lax.broadcasted_iota(jnp.int32, (tb, tv), 1)
    tgt_local = tgt - j * tv              # (tb, 1)

    # -true_dist per element (padding column handled in the epilogue):
    coef = jnp.where(col_local == tgt_local,
                     jnp.float32(-confidence), jnp.float32(-base))
    p = coef * xf                         # (tb, tv)

    # Lane-wide accumulation: fold tv lanes down to 128 with pure VPU adds;
    # no cross-lane (XLU) reduction inside the vocab loop.
    folded = p[:, 0:128]
    for k in range(1, tv // 128):
        folded = folded + p[:, k * 128:(k + 1) * 128]
    acc_ref[...] += folded

    @pl.when(j == nv - 1)
    def _finalize():
        nonpad = tgt != padding_idx       # (tb, 1) bool
        # Single cross-lane reduce per batch tile.
        row = jnp.sum(acc_ref[...], axis=1, keepdims=True)
        # coef assigned -base to the padding column; its true coefficient is
        # 0, so add back base * x[:, padding_idx] for non-padding rows.
        fix = jnp.float32(base) * xpad_ref[...]
        # Entropy term sum_j td*log(td) is a constant per non-padding row;
        # rows with target == padding_idx contribute exactly 0.
        out_ref[...] = jnp.where(
            nonpad, row + fix + jnp.float32(ent_const), jnp.float32(0.0))


def _pick_tile(full, align, max_tile):
    """Largest tile <= max_tile that is a multiple of `align` and divides
    `full`; falls back to the full extent (always legal for BlockSpec)."""
    if full % align != 0 or full <= align:
        return full
    t = min(max_tile, full)
    t -= t % align
    while full % t != 0:
        t -= align
    return t


def _pick_tile_b(B, align, cap=512):
    """Like _pick_tile, but prefers >= 2 batch tiles when B permits so the
    'parallel' batch axis can be split across v7x's two TensorCores."""
    if B % align != 0 or B <= align:
        return B
    half = (B // 2) // align * align
    t = min(cap, B, max(align, half))
    t -= t % align
    while B % t != 0:
        t -= align
    return t


def label_smoothing_loss(x, target, *, size, padding_idx, smoothing,
                         tile_b=None, tile_v=None):
    """x: [B, V] log-probs (f32 or bf16), target: [B] int class indices.
    Returns the scalar KLDivLoss(size_average=False) value."""
    B, V = x.shape
    assert V == size

    tgt2d = target.astype(jnp.int32).reshape(B, 1)
    # Tiny (B, 1) column input used only in the epilogue correction.
    xpad = x[:, padding_idx:padding_idx + 1].astype(jnp.float32)

    # Pad the vocab to a multiple of 128 (zero columns contribute exactly 0
    # since their coefficient multiplies a zero value).
    itemsize = jnp.dtype(x.dtype).itemsize
    Vp = ((V + 127) // 128) * 128
    if Vp != V:
        x = jnp.pad(x, ((0, 0), (0, Vp - V)))

    # Sublane alignment for the streamed x blocks depends on dtype packing.
    align_b = {4: 8, 2: 16, 1: 32}.get(itemsize, 8)

    if tile_b is None:
        tile_b = _pick_tile_b(B, align_b, 512)
    if tile_v is None:
        # Cap x blocks at ~8 MiB: safe on v7x's 64 MiB VMEM, plenty to
        # amortize per-step overhead on v5e/v6e too.
        budget = 8 * 1024 * 1024
        max_tv = max(128, (budget // (max(tile_b, 1) * itemsize)) // 128 * 128)
        tile_v = _pick_tile(Vp, 128, max_tv)
    assert B % tile_b == 0 and Vp % tile_v == 0

    confidence = 1.0 - smoothing
    base = smoothing / (size - 2)
    # Trace-time entropy constant per non-padding row (0*log(0) := 0).
    ent_const = 0.0
    if confidence > 0.0:
        ent_const += confidence * math.log(confidence)
    if base > 0.0:
        ent_const += (size - 2) * base * math.log(base)

    kernel = functools.partial(
        _label_smoothing_kernel,
        padding_idx=padding_idx, confidence=confidence, base=base,
        ent_const=ent_const)

    per_row = pl.pallas_call(
        kernel,
        out_shape=jax.ShapeDtypeStruct((B, 1), jnp.float32),
        grid_spec=pltpu.PrefetchScalarGridSpec(
            num_scalar_prefetch=0,
            grid=(B // tile_b, Vp // tile_v),
            in_specs=[
                pl.BlockSpec((tile_b, 1), lambda i, j: (i, 0)),       # target
                pl.BlockSpec((tile_b, tile_v), lambda i, j: (i, j)),  # x
                pl.BlockSpec((tile_b, 1), lambda i, j: (i, 0)),       # x[:,pad]
            ],
            out_specs=pl.BlockSpec((tile_b, 1), lambda i, j: (i, 0)),
            scratch_shapes=[pltpu.VMEM((tile_b, 128), jnp.float32)]),
        compiler_params=pltpu.CompilerParams(
            dimension_semantics=("parallel", "arbitrary"),
            vmem_limit_bytes=40 * 1024 * 1024),
    )(tgt2d, x, xpad)
    return jnp.sum(per_row)


def _reference_loss(x, target, *, size, padding_idx, smoothing):
    """Plain-JAX reference mirroring the PyTorch forward."""
    B, V = x.shape
    x = x.astype(jnp.float32)
    confidence = 1.0 - smoothing
    td = jnp.full((B, V), smoothing / (size - 2), dtype=jnp.float32)
    td = td.at[jnp.arange(B), target].set(confidence)
    td = td.at[:, padding_idx].set(0.0)
    td = jnp.where((target == padding_idx)[:, None], 0.0, td)
    safe = jnp.where(td > 0, td, 1.0)
    return jnp.sum(td * jnp.log(safe) - td * x)


if __name__ == "__main__":
    B = 16          # batch_size
    V = 1024        # tgt_vocab_size (self.size)
    padding_idx = 0
    smoothing = 0.1

    key = jax.random.PRNGKey(0)
    k_logits, k_tgt = jax.random.split(key)

    logits = jax.random.normal(k_logits, (B, V), dtype=jnp.float32)
    x = jax.nn.log_softmax(logits, axis=-1)        # model log-probs
    target = jax.random.randint(k_tgt, (B,), 0, V, dtype=jnp.int32)
    # Make a couple of positions padding to exercise the row-zero path.
    target = target.at[1].set(padding_idx).at[5].set(padding_idx)

    # 1) explicit small tiles: exercises the multi-step vocab reduction
    #    (resident lane-wide accumulator + epilogue reduce).
    loss_tiled = label_smoothing_loss(
        x, target, size=V, padding_idx=padding_idx, smoothing=smoothing,
        tile_b=8, tile_v=256)
    # 2) auto-picked tiles (production path).
    loss_auto = label_smoothing_loss(
        x, target, size=V, padding_idx=padding_idx, smoothing=smoothing)
    # 3) native bf16 input path (no wrapper cast; upcast per tile in-kernel).
    x_bf16 = x.astype(jnp.bfloat16)
    loss_bf16 = label_smoothing_loss(
        x_bf16, target, size=V, padding_idx=padding_idx, smoothing=smoothing)
    # 4) vocab not divisible by 128 (exercises the wrapper-side zero pad).
    V2 = 1000
    logits2 = jax.random.normal(jax.random.PRNGKey(1), (B, V2), jnp.float32)
    x2 = jax.nn.log_softmax(logits2, axis=-1)
    target2 = jax.random.randint(jax.random.PRNGKey(2), (B,), 0, V2, jnp.int32)
    target2 = target2.at[3].set(padding_idx)
    loss_pad = label_smoothing_loss(
        x2, target2, size=V2, padding_idx=padding_idx, smoothing=smoothing)

    outs = jax.block_until_ready((loss_tiled, loss_auto, loss_bf16, loss_pad))
    loss_tiled, loss_auto, loss_bf16, loss_pad = outs

    ref = _reference_loss(
        x, target, size=V, padding_idx=padding_idx, smoothing=smoothing)
    ref_bf16 = _reference_loss(
        x_bf16, target, size=V, padding_idx=padding_idx, smoothing=smoothing)
    ref_pad = _reference_loss(
        x2, target2, size=V2, padding_idx=padding_idx, smoothing=smoothing)

    assert jnp.allclose(loss_tiled, ref, rtol=1e-5, atol=1e-3), (loss_tiled, ref)
    assert jnp.allclose(loss_auto, ref, rtol=1e-5, atol=1e-3), (loss_auto, ref)
    assert jnp.allclose(loss_bf16, ref_bf16, rtol=1e-4, atol=1e-2), (loss_bf16, ref_bf16)
    assert jnp.allclose(loss_pad, ref_pad, rtol=1e-5, atol=1e-3), (loss_pad, ref_pad)

    print("KERNEL_OK")
</pallas_src>

<mosaic_0001>
module attributes {stable_mosaic.version = 11 : i64} {
  func.func @_label_smoothing_kernel(%arg0: i32, %arg1: i32, %arg2: memref<8x1xi32, #tpu.memory_space<vmem>>, %arg3: memref<8x256xf32, #tpu.memory_space<vmem>>, %arg4: memref<8x1xf32, #tpu.memory_space<vmem>>, %arg5: memref<8x1xf32, #tpu.memory_space<vmem>>, %arg6: memref<8x128xf32, #tpu.memory_space<vmem>>) attributes {dimension_semantics = [#tpu.dimension_semantics<parallel>, #tpu.dimension_semantics<arbitrary>], iteration_bounds = array<i64: 2, 4>, scalar_prefetch = 0 : i64, scratch_operands = 1 : i64, tpu.core_type = #tpu.core_type<tc>, window_params = [{transform_indices = @transform_0, window_bounds = array<i64: 8, 1>}, {transform_indices = @transform_1, window_bounds = array<i64: 8, 256>}, {transform_indices = @transform_2, window_bounds = array<i64: 8, 1>}, {transform_indices = @transform_3, window_bounds = array<i64: 8, 1>}]} {
    %c0_i32 = arith.constant 0 : i32
    %0 = arith.cmpi eq, %arg1, %c0_i32 : i32
    %1 = arith.extui %0 : i1 to i32
    %c0_i32_0 = arith.constant 0 : i32
    %2 = arith.cmpi ne, %1, %c0_i32_0 : i32
    scf.if %2 {
      %cst_10 = arith.constant 0.000000e+00 : f32
      %24 = vector.broadcast %cst_10 : f32 to vector<8x128xf32>
      %c0_11 = arith.constant 0 : index
      %c0_12 = arith.constant 0 : index
      %25 = vector.load %arg6[%c0_11, %c0_12] : memref<8x128xf32, #tpu.memory_space<vmem>>, vector<8x128xf32>
      tpu.vector_store %arg6[%c0_11, %c0_12], %24 {strides = array<i32>} : memref<8x128xf32, #tpu.memory_space<vmem>>, vector<8x128xf32>,
    } else {
    }
    %c0 = arith.constant 0 : index
    %c0_1 = arith.constant 0 : index
    %3 = vector.load %arg3[%c0, %c0_1] : memref<8x256xf32, #tpu.memory_space<vmem>>, vector<8x256xf32>
    %c0_2 = arith.constant 0 : index
    %c0_3 = arith.constant 0 : index
    %4 = vector.load %arg2[%c0_2, %c0_3] : memref<8x1xi32, #tpu.memory_space<vmem>>, vector<8x1xi32>
    %5 = tpu.iota {dimensions = array<i32: 1>} : vector<8x256xi32>
    %c256_i32 = arith.constant 256 : i32
    %6 = arith.muli %arg1, %c256_i32 : i32
    %7 = vector.broadcast %6 : i32 to vector<8x1xi32>
    %8 = arith.subi %4, %7 : vector<8x1xi32>
    %9 = vector.broadcast %8 : vector<8x1xi32> to vector<8x256xi32>
    %10 = arith.cmpi eq, %5, %9 : vector<8x256xi32>
    %cst = arith.constant -0.899999976 : f32
    %cst_4 = arith.constant -9.78473617E-5 : f32
    %11 = vector.broadcast %cst : f32 to vector<8x256xf32>
    %12 = vector.broadcast %cst_4 : f32 to vector<8x256xf32>
    %13 = arith.select %10, %11, %12 : vector<8x256xi1>, vector<8x256xf32>
    %14 = arith.mulf %13, %3 : vector<8x256xf32>
    %15 = vector.extract_strided_slice %14 {offsets = [0, 0], sizes = [8, 128], strides = [1, 1]} : vector<8x256xf32> to vector<8x128xf32>
    %16 = vector.extract_strided_slice %14 {offsets = [0, 128], sizes = [8, 128], strides = [1, 1]} : vector<8x256xf32> to vector<8x128xf32>
    %17 = arith.addf %15, %16 : vector<8x128xf32>
    %c0_5 = arith.constant 0 : index
    %c0_6 = arith.constant 0 : index
    %18 = vector.load %arg6[%c0_5, %c0_6] : memref<8x128xf32, #tpu.memory_space<vmem>>, vector<8x128xf32>
    %19 = arith.addf %18, %17 : vector<8x128xf32>
    %c0_7 = arith.constant 0 : index
    %c0_8 = arith.constant 0 : index
    %20 = vector.load %arg6[%c0_7, %c0_8] : memref<8x128xf32, #tpu.memory_space<vmem>>, vector<8x128xf32>
    tpu.vector_store %arg6[%c0_7, %c0_8], %19 {strides = array<i32>} : memref<8x128xf32, #tpu.memory_space<vmem>>, vector<8x128xf32>,
    %c3_i32 = arith.constant 3 : i32
    %21 = arith.cmpi eq, %arg1, %c3_i32 : i32
    %22 = arith.extui %21 : i1 to i32
    %c0_i32_9 = arith.constant 0 : i32
    %23 = arith.cmpi ne, %22, %c0_i32_9 : i32
    scf.if %23 {
      %c0_i32_10 = arith.constant 0 : i32
      %24 = vector.broadcast %c0_i32_10 : i32 to vector<8x1xi32>
      %25 = arith.cmpi ne, %4, %24 : vector<8x1xi32>
      %c0_11 = arith.constant 0 : index
      %c0_12 = arith.constant 0 : index
      %26 = vector.load %arg6[%c0_11, %c0_12] : memref<8x128xf32, #tpu.memory_space<vmem>>, vector<8x128xf32>
      %cst_13 = arith.constant dense<0.000000e+00> : vector<8xf32>
      %27 = vector.multi_reduction <add>, %26, %cst_13 [1] : vector<8x128xf32> to vector<8xf32>
      %28 = vector.shape_cast %27 : vector<8xf32> to vector<8x1xf32>
      %c0_14 = arith.constant 0 : index
      %c0_15 = arith.constant 0 : index
      %29 = vector.load %arg4[%c0_14, %c0_15] : memref<8x1xf32, #tpu.memory_space<vmem>>, vector<8x1xf32>
      %cst_16 = arith.constant 9.78473617E-5 : f32
      %30 = vector.broadcast %cst_16 : f32 to vector<8x1xf32>
      %31 = arith.mulf %30, %29 : vector<8x1xf32>
      %32 = arith.addf %28, %31 : vector<8x1xf32>
      %cst_17 = arith.constant -1.0180347 : f32
      %33 = vector.broadcast %cst_17 : f32 to vector<8x1xf32>
      %34 = arith.addf %32, %33 : vector<8x1xf32>
      %cst_18 = arith.constant 0.000000e+00 : f32
      %35 = vector.broadcast %cst_18 : f32 to vector<8x1xf32>
      %36 = arith.select %25, %34, %35 : vector<8x1xi1>, vector<8x1xf32>
      %c0_19 = arith.constant 0 : index
      %c0_20 = arith.constant 0 : index
      %37 = vector.load %arg5[%c0_19, %c0_20] : memref<8x1xf32, #tpu.memory_space<vmem>>, vector<8x1xf32>
      tpu.vector_store %arg5[%c0_19, %c0_20], %36 {strides = array<i32>} : memref<8x1xf32, #tpu.memory_space<vmem>>, vector<8x1xf32>,
    } else {
    }
    return
  }
  func.func @transform_0(%arg0: i32, %arg1: i32) -> (i32, i32) {
    %c0_i32 = arith.constant 0 : i32
    %c0_i32_0 = arith.constant 0 : i32
    return %arg0, %c0_i32 : i32, i32
  }
  func.func @transform_1(%arg0: i32, %arg1: i32) -> (i32, i32) {
    %c0_i32 = arith.constant 0 : i32
    return %arg0, %arg1 : i32, i32
  }
  func.func @transform_2(%arg0: i32, %arg1: i32) -> (i32, i32) {
    %c0_i32 = arith.constant 0 : i32
    %c0_i32_0 = arith.constant 0 : i32
    return %arg0, %c0_i32 : i32, i32
  }
  func.func @transform_3(%arg0: i32, %arg1: i32) -> (i32, i32) {
    %c0_i32 = arith.constant 0 : i32
    %c0_i32_0 = arith.constant 0 : i32
    return %arg0, %c0_i32 : i32, i32
  }
}

</mosaic_0001>

<bundles_post_ra>
// kernel: tpu_custom_call.1
= control target key start
LH: loop header
LB: loop body
LE: loop exit
PB: predicated region body
PF: predicated region fallthrough
CT: control target
= control target key end

     0   :  { %8 = vsyncpa [#allocation4], 0  ;;  %s736_s0 = inlined_call_operand.vmem [shape: s32[16,1], index: 0, kind: input, shape index: {}]   ;;  %s737_s1 = inlined_call_operand.hbm [shape: f32[16,1024], index: 1, kind: input, shape index: {}]   ;;  %s738_s2 = inlined_call_operand.vmem [shape: f32[16,1], index: 2, kind: input, shape index: {}]   ;;  %s739_s3 = inlined_call_operand.vmem [shape: f32[16,1], index: 3, kind: output, shape index: {}]  }
   0x1   :  { %10 = vsyncpa [#allocation4 + $0x1], 0  ;;  %s599_s12 = smov 0   ;;  %s601_s13 = smov 0  }
   0x2   :  { %s603_s14 = smov 0   ;;  %s605_s15 = smov 0  }
   0x3   :  { %s607_s16 = smov 0   ;;  %s609_s17 = smov 0  }
   0x4   :  { %s611_s18 = smov 0   ;;  %s613_s19 = smov 0  }
   0x5 LB: > { %s385_s20 = sadd.s32 4294967295, %s574_s19   ;;  %s25_s21 = sadd.s32 1, %s566_s17  ;;  %s574_s19 = sphi %s613_s19, %s16_s19   ;;  %s570_s18 = sphi %s611_s18, %s748_s18   ;;  %s566_s17 = sphi %s609_s17, %s747_s17   ;;  %s562_s16 = sphi %s607_s16, %s746_s16   ;;  %s558_s15 = sphi %s605_s15, %s745_s15   ;;  %s554_s14 = sphi %s603_s14, %s744_s14   ;;  %s550_s13 = sphi %s601_s13, %s743_s13   ;;  %s546_s12 = sphi %s599_s12, %s742_s12  }
   0x6   : > { %p26_p0 = scmp.ge.s32.totalorder %s25_s21, 4  ;;  %s28_s22 = sadd.s32 1, %s570_s18 }
   0x7   : > { %s63_s23 = sadd.s32 1, %s554_s14  ;;  %p70_p1 = scmp.ne.s32.totalorder %s554_s14, %s550_s13 }
   0x8   : > { %s750_s21 = smov (%p26_p0, %s25_s21), 0  ;;  %s752_s22 = smov (!%p26_p0, %s28_s22), %s570_s18 }
   0x9   : > { %s59_s24 = ssub.s32 %s566_s17, %s750_s21  ;;  %p71_p2 = scmp.eq.s32.totalorder %s574_s19, 0 }
   0xa   : > { %p30_p3 = scmp.ge.s32.totalorder %s752_s22, 2  ;;  %p76_p4 = scmp.ne.s32.totalorder %s550_s13, %s546_s12 }
   0xb   : > { %p650_p5 = por %p71_p2, %p70_p1  ;;  %p77_p6 = scmp.eq.s32.totalorder %s385_s20, 0 }
   0xc   : > { %s754_s22 = smov (%p30_p3, %s752_s22), 0  ;;  %p409_p8 = scmp.lt.s32.totalorder %s574_s19, 8 }
   0xd   : > { %p656_p7 = por %p77_p6, %p76_p4  ;;  %s58_s27 = ssub.s32 %s570_s18, %s754_s22 }
   0xe   : > { %s60_s28 = sor.u32 %s59_s24, %s58_s27  ;;  %s159_s29 = sand.u32 1, %s554_s14  }
   0xf   : > { %p61_p9 = scmp.eq.s32.totalorder %s60_s28, 0  ;;  %s389_s30 = sshll.u32 %s159_s29, 4 }
  0x10   : > { %s390_s4 = sshll.u32 %s566_s17, 1  ;;  %s391_s6 = sshll.u32 %s570_s18, 3 }
  0x11   : > { %s666_s5 = scalar_select %p61_p9, %s554_s14, %s63_s23  }
  0x12   : > { %s168_s7 = sadd.s32 %s391_s6, %s390_s4  ;;  %s163_s8 = scalar_lea.vmem [#allocation3], %s389_s30 }
  0x13   : > { %s174_s9 = sshll.u32 %s163_s8, 4  ;;  %s392_s10 = sshll.u32 %s168_s7, 3  ;;  %s175_s9 = int_to_ptr.vmem [resolvable:$true] %s174_s9 }
  0x14   : > { %s170_s20 = scalar_lea.hbm %s737_s1, %s392_s10  ;;  %p406_p10 = pnand %p409_p8, %p650_p5 }
  0x15   : > { %s172_s24 = sshll.u32 %s170_s20, 4  ;;  %p393_p11 = scmp.ge.s32.totalorder %s574_s19, 1  ;;  %s173_s24 = int_to_ptr.hbm [resolvable:$true] %s172_s24 }
  0x16   : > { %s160_s27 = scalar_lea.sflag [#allocation4], %s159_s29  ;;  %p186_p12 = scmp.lt.s32.totalorder %s574_s19, 9 }
  0x17   : > { %408 = dma.hbm_to_vmem [thread:$0]  (!%p406_p10), %s173_s24, 256, %s175_s9, %s160_s27  }
  0x18   : > { %p187_p13 = pnand %p393_p11, %p186_p12 }
  0x19   : > { %s192_s23 = sand.u32 (!%p187_p13), 1, %s550_s13  }
  0x1a   : > { %190 = sbr.rel (%p187_p13) target bundleno = 298 (0x12a), region = 32  ;;  %s394_s28 = sshll.u32 (!%p187_p13), %s192_s23, 4 }
  0x1b   : > { %s193_s30 = scalar_lea.sflag (!%p187_p13), [#allocation4], %s192_s23  ;;  %s196_s4 = scalar_lea.vmem (!%p187_p13), [#allocation3], %s394_s28 }
  0x1f   : > { %541 = dma.done.wait (%p656_p7), %s193_s30, 256  }
  0x20   : > { %543 = vsyncadd (%p656_p7), %s193_s30, 4294967040  ;;  %p227_p0 = scmp.lt.s32.totalorder %s562_s16, 1  ;;  %p398_p1 = scmp.ne.s32.totalorder %s558_s15, 0 }
  0x22   : > { %s756_s16 = smov (!%p227_p0, %s562_s16), 1  ;;  %243 = sbr.rel (%p398_p1) target bundleno = 41 (0x29), region = 40 }
  0x23   : > { %s685_s25 = sshll.u32 %s756_s16, 3 }
  0x24   : > { %s230_s7 = scalar_lea.vmem %s736_s0, %s685_s25  ;;  %s235_s10 = scalar_lea.vmem %s738_s2, %s685_s25 }
  0x25   : > { %s239_s12 = scalar_lea.vmem %s739_s3, %s685_s25 }
  0x27   : > { %v576_v0 = vmov 0.0  }
  0x28   : > { %244 = vst [vmem:[#allocation2] sm:$0xff] %v576_v0 }
  0x29 PF: > { %v247_v1 = vld [vmem:[%s230_s7] sm:$0xff]  ;;  %s399_s16 = sshll.u32 %s558_s15, 8  ;;  %v577_v2 = vmov 0   ;;  %v248_v5 = vlaneseq  ;;  %v245_v9 = vld [vmem:[%s196_s4] sm:$0xff]  ;;  %v578_v11 = vmov -9.784736e-05  }
  0x2a   : > { %477 = vset.pattern.permute.xlu0 %v577_v2  ;;  %v252_v3 = vstv %s399_s16  ;;  %v246_v10 = vld [vmem:[%s196_s4 + $0x8] sm:$0xff]  ;;  %p400_p2 = scmp.ne.s32.totalorder %s558_s15, 3 }
  0x2b   : > { %v253_v4 = vsub.s32 %v247_v1, %v252_v3  ;;  %v249_v6 = vand.u32 127, %v248_v5 }
  0x2d   : > { %255 = vperm.xlu0 %477, %v253_v4   ;;  %v250_v7 = vadd.s32 128, %v249_v6 }
  0x2f   : > { %v264_v16 = vld [vmem:[#allocation2] sm:$0xff] }
  0x9f   : > { %v256_v8 = vpop.permute.xlu0 %255 }
  0xa0   : > { %vm257_vm0 = vcmp.eq.s32.totalorder %v249_v6, %v256_v8  ;;  %vm258_vm1 = vcmp.eq.s32.totalorder %v250_v7, %v256_v8 }
  0xa1   : > { %v259_v12 = vsel %vm257_vm0, -0.9, %v578_v11  ;;  %v260_v13 = vsel %vm258_vm1, -0.9, %v578_v11 }
  0xa2   : > { %v261_v14 = vmul.f32 %v259_v12, %v245_v9  ;;  %v262_v15 = vmul.f32 %v260_v13, %v246_v10 }
  0xa4   : > { %v263_v17 = vadd.f32 %v262_v15, %v261_v14  ;;  %270 = sbr.rel (%p400_p2) target bundleno = 298 (0x12a), region = 44 }
  0xa6   : > { %v265_v18 = vadd.f32 %v264_v16, %v263_v17 }
  0xa8   : > { %266 = vst [vmem:[#allocation2] sm:$0xff] %v265_v18 }
  0xa9   : > { %v275_v20 = vld [vmem:[%s235_s10] sm:$0xff]  ;;  %vm271_vm2 = vcmp.ne.s32.totalorder %v247_v1, 0  ;;  %vm280_vm3 = vcmask 7168  }
  0xaa   : > { %v276_v21 = vmul.f32 9.784736e-05, %v275_v20 }
  0xaf   : > { %v272_v19 = vld [vmem:[#allocation2] sm:$0xff] }
  0xb0   : > { %273 = vadd.xlane.f32.xlu0 %v272_v19 }
 0x123   : > { %v274_v22 = vpop.xlane.xlu0 %273 }
 0x124   : > { %v277_v23 = vadd.f32 %v276_v21, %v274_v22 }
 0x126   : > { %v278_v24 = vadd.f32 -1.0180347, %v277_v23 }
 0x128   : > { %v279_v25 = vsel %vm271_vm2, %v278_v24, 0.0 }
 0x129   : > { %281 = vst.msk [vmem:[%s239_s12] sm:$0xff] %vm280_vm3, %v279_v25 }
 0x12a PF: > { %s16_s19 = sadd.s32 1, %s574_s19   ;;  %s742_s12 = smov %s550_s13 }
 0x12b   : > { %p13_p3 = scmp.ge.s32.totalorder %s16_s19, 10   ;;  %s743_s13 = smov %s554_s14 }
 0x12c   : > { %s744_s14 = smov %s666_s5  ;;  %s745_s15 = smov %s566_s17 }
 0x12d   : > { %s746_s16 = smov %s570_s18  ;;  %s747_s17 = smov %s750_s21 }
 0x12e   : > { %s748_s18 = smov %s754_s22  ;;  %15 = sbr.rel (!%p13_p3) target bundleno = 5 (0x5), region = 86 }
 0x133   :  { %301 = vsyncpa [#allocation4], 1 }
 0x134   :  { %303 = vsyncpa [#allocation4 + $0x1], 1 }

</bundles_post_ra>
